<compile_context>
chip_gen: v7x
topology: tpu7x:2x2x1
jax: 0.10.0
libtpu: 0.0.40
codegen_flags: <defaults>
</compile_context>

<pallas_src>
import jax
import jax.numpy as jnp
from jax.experimental import pallas as pl
from jax.experimental.pallas import tpu as pltpu


def _mlp_kernel(x_ref, w1_ref, b1_ref, w2_ref, b2_ref, o_ref):
    # First linear (bf16 inputs, f32 accumulation) + bias + ReLU in f32.
    h = jnp.dot(x_ref[...], w1_ref[...], preferred_element_type=jnp.float32)
    h = jnp.maximum(h + b1_ref[...], 0.0)          # b1 is (1, hidden), broadcasts
    # Second linear -> padded embedding (bf16 feed to MXU, f32 accumulation).
    o = jnp.dot(h.astype(jnp.bfloat16), w2_ref[...],
                preferred_element_type=jnp.float32)
    o_ref[...] = (o + b2_ref[...]).astype(o_ref.dtype)   # b2 is (1, emb_pad)


def _pick_batch_tile(B, requested):
    """Clamp the batch tile to the batch, keep >=2 grid steps when possible
    (v7x megacore), and keep it a multiple of 8 that divides B."""
    if B <= 8:
        return B
    bt = min(requested, B)
    if bt > B // 2:
        bt = B // 2                      # at least 2 grid steps
    bt = max(8, (bt // 8) * 8)           # sublane alignment
    while B % bt != 0:                   # must tile the batch evenly
        bt -= 8
    return bt


def simple_metric_embedding_forward(x, w1, b1, w2, b2, *, batch_tile=512):
    """Forward pass of SimpleMetricEmbedding as a Pallas TPU kernel.

    x : (B, card_num) float32
    w1: (card_num, hidden)   b1: (hidden,)
    w2: (hidden, emb_size)   b2: (emb_size,)
    returns (B, emb_size) float32
    """
    B, card_num = x.shape
    hidden = w1.shape[1]
    emb_size = w2.shape[1]

    bt = _pick_batch_tile(B, batch_tile)
    assert B % bt == 0

    # Lane-dense output: pad the embedding dim up to a multiple of 128.
    emb_pad = ((emb_size + 127) // 128) * 128

    # bf16 feeds for the MXU; biases stay f32.
    x_bf = x.astype(jnp.bfloat16)
    w1_bf = w1.astype(jnp.bfloat16)
    w2_bf = jnp.pad(w2, ((0, 0), (0, emb_pad - emb_size))).astype(jnp.bfloat16)
    b1_2d = b1.reshape(1, hidden).astype(jnp.float32)
    b2_2d = jnp.pad(b2, (0, emb_pad - emb_size)).reshape(1, emb_pad).astype(jnp.float32)

    grid = (B // bt,)

    # VMEM budget (double-buffered inputs/outputs + f32 hidden temp) + headroom.
    x_tile_b = bt * card_num * 2
    w_b = card_num * hidden * 2 + hidden * emb_pad * 2 + hidden * 4 + emb_pad * 4
    out_tile_b = bt * emb_pad * 4
    h_b = bt * hidden * 4
    vmem_needed = 2 * (x_tile_b + w_b + out_tile_b) + h_b
    vmem_limit = int(min(max(2 * vmem_needed, 4 << 20), 48 << 20))

    cost = pl.CostEstimate(
        flops=2 * B * (card_num * hidden + hidden * emb_pad),
        transcendentals=0,
        bytes_accessed=B * card_num * 2 + w_b + B * emb_pad * 4,
    )

    out_padded = pl.pallas_call(
        _mlp_kernel,
        out_shape=jax.ShapeDtypeStruct((B, emb_pad), jnp.float32),
        grid_spec=pl.GridSpec(
            grid=grid,
            in_specs=[
                pl.BlockSpec((bt, card_num), lambda i: (i, 0)),     # x tile (bf16)
                pl.BlockSpec((card_num, hidden), lambda i: (0, 0)),  # W1 (resident)
                pl.BlockSpec((1, hidden), lambda i: (0, 0)),         # b1 (f32)
                pl.BlockSpec((hidden, emb_pad), lambda i: (0, 0)),   # W2 padded (resident)
                pl.BlockSpec((1, emb_pad), lambda i: (0, 0)),        # b2 padded (f32)
            ],
            out_specs=pl.BlockSpec((bt, emb_pad), lambda i: (i, 0)),  # lane-dense out
        ),
        compiler_params=pltpu.CompilerParams(
            dimension_semantics=("parallel",),
            vmem_limit_bytes=vmem_limit,
        ),
        cost_estimate=cost,
    )(x_bf, w1_bf, b1_2d, w2_bf, b2_2d)

    return out_padded[:, :emb_size]


if __name__ == "__main__":
    # Module hyper-params (small, consistent with __init__):
    card_num = 256          # input feature size
    hidden = card_num // 2  # 128
    emb_size = 32
    batch = 16

    key = jax.random.PRNGKey(0)
    k_x, k_w1, k_b1, k_w2, k_b2 = jax.random.split(key, 5)

    # Deterministic synthetic parameters (torch-Linear-style uniform init ranges).
    x = jax.random.normal(k_x, (batch, card_num), dtype=jnp.float32)
    lim1 = 1.0 / (card_num ** 0.5)
    lim2 = 1.0 / (hidden ** 0.5)
    w1 = jax.random.uniform(k_w1, (card_num, hidden), jnp.float32, -lim1, lim1)
    b1 = jax.random.uniform(k_b1, (hidden,), jnp.float32, -lim1, lim1)
    w2 = jax.random.uniform(k_w2, (hidden, emb_size), jnp.float32, -lim2, lim2)
    b2 = jax.random.uniform(k_b2, (emb_size,), jnp.float32, -lim2, lim2)

    out = simple_metric_embedding_forward(x, w1, b1, w2, b2)
    out = jax.block_until_ready(out)
    assert out.shape == (batch, emb_size)

    # Reference with the same bf16 inputs/weights and f32 accumulation.
    h_ref = jnp.maximum(
        jnp.dot(x.astype(jnp.bfloat16), w1.astype(jnp.bfloat16),
                preferred_element_type=jnp.float32) + b1, 0.0)
    ref_bf16 = jnp.dot(h_ref.astype(jnp.bfloat16), w2.astype(jnp.bfloat16),
                       preferred_element_type=jnp.float32) + b2
    assert jnp.allclose(out, ref_bf16, atol=1e-3, rtol=1e-3)

    # Looser sanity check against the full-f32 reference (bf16 rounding error only).
    ref_f32 = jnp.maximum(x @ w1 + b1, 0.0) @ w2 + b2
    assert jnp.allclose(out, ref_f32, atol=5e-2, rtol=5e-2)

    print("KERNEL_OK")
</pallas_src>

<mosaic_0001>
module attributes {stable_mosaic.version = 11 : i64} {
  func.func @_mlp_kernel(%arg0: i32, %arg1: memref<8x256xbf16, #tpu.memory_space<vmem>>, %arg2: memref<256x128xbf16, #tpu.memory_space<vmem>>, %arg3: memref<1x128xf32, #tpu.memory_space<vmem>>, %arg4: memref<128x128xbf16, #tpu.memory_space<vmem>>, %arg5: memref<1x128xf32, #tpu.memory_space<vmem>>, %arg6: memref<8x128xf32, #tpu.memory_space<vmem>>) attributes {dimension_semantics = [#tpu.dimension_semantics<parallel>], iteration_bounds = array<i64: 2>, scalar_prefetch = 0 : i64, scratch_operands = 0 : i64, tpu.core_type = #tpu.core_type<tc>, window_params = [{transform_indices = @transform_0, window_bounds = array<i64: 8, 256>}, {pipeline_mode = #tpu.pipeline_mode<synchronous>, transform_indices = @transform_1, window_bounds = array<i64: 256, 128>}, {pipeline_mode = #tpu.pipeline_mode<synchronous>, transform_indices = @transform_2, window_bounds = array<i64: 1, 128>}, {pipeline_mode = #tpu.pipeline_mode<synchronous>, transform_indices = @transform_3, window_bounds = array<i64: 128, 128>}, {pipeline_mode = #tpu.pipeline_mode<synchronous>, transform_indices = @transform_4, window_bounds = array<i64: 1, 128>}, {transform_indices = @transform_5, window_bounds = array<i64: 8, 128>}]} {
    %c0 = arith.constant 0 : index
    %c0_0 = arith.constant 0 : index
    %0 = vector.load %arg1[%c0, %c0_0] : memref<8x256xbf16, #tpu.memory_space<vmem>>, vector<8x256xbf16>
    %c0_1 = arith.constant 0 : index
    %c0_2 = arith.constant 0 : index
    %1 = vector.load %arg2[%c0_1, %c0_2] : memref<256x128xbf16, #tpu.memory_space<vmem>>, vector<256x128xbf16>
    %cst = arith.constant dense<0.000000e+00> : vector<8x128xf32>
    %2 = tpu.matmul %0, %1, %cst {dimension_numbers = #tpu.dot_dimension_numbers<[1], [0], [0], [1], [0, 0, 1, 1], [], []>} : vector<8x256xbf16>, vector<256x128xbf16>, vector<8x128xf32> -> vector<8x128xf32>
    %c0_3 = arith.constant 0 : index
    %c0_4 = arith.constant 0 : index
    %3 = vector.load %arg3[%c0_3, %c0_4] : memref<1x128xf32, #tpu.memory_space<vmem>>, vector<1x128xf32>
    %4 = vector.broadcast %3 : vector<1x128xf32> to vector<8x128xf32>
    %5 = arith.addf %2, %4 : vector<8x128xf32>
    %cst_5 = arith.constant 0.000000e+00 : f32
    %6 = vector.broadcast %cst_5 : f32 to vector<8x128xf32>
    %7 = arith.maximumf %5, %6 : vector<8x128xf32>
    %8 = arith.truncf %7 : vector<8x128xf32> to vector<8x128xbf16>
    %c0_6 = arith.constant 0 : index
    %c0_7 = arith.constant 0 : index
    %9 = vector.load %arg4[%c0_6, %c0_7] : memref<128x128xbf16, #tpu.memory_space<vmem>>, vector<128x128xbf16>
    %cst_8 = arith.constant dense<0.000000e+00> : vector<8x128xf32>
    %10 = tpu.matmul %8, %9, %cst_8 {dimension_numbers = #tpu.dot_dimension_numbers<[1], [0], [0], [1], [0, 0, 1, 1], [], []>} : vector<8x128xbf16>, vector<128x128xbf16>, vector<8x128xf32> -> vector<8x128xf32>
    %c0_9 = arith.constant 0 : index
    %c0_10 = arith.constant 0 : index
    %11 = vector.load %arg5[%c0_9, %c0_10] : memref<1x128xf32, #tpu.memory_space<vmem>>, vector<1x128xf32>
    %12 = vector.broadcast %11 : vector<1x128xf32> to vector<8x128xf32>
    %13 = arith.addf %10, %12 : vector<8x128xf32>
    %c0_11 = arith.constant 0 : index
    %c0_12 = arith.constant 0 : index
    %14 = vector.load %arg6[%c0_11, %c0_12] : memref<8x128xf32, #tpu.memory_space<vmem>>, vector<8x128xf32>
    tpu.vector_store %arg6[%c0_11, %c0_12], %13 {strides = array<i32>} : memref<8x128xf32, #tpu.memory_space<vmem>>, vector<8x128xf32>,
    return
  }
  func.func @transform_0(%arg0: i32) -> (i32, i32) {
    %c0_i32 = arith.constant 0 : i32
    %c0_i32_0 = arith.constant 0 : i32
    return %arg0, %c0_i32 : i32, i32
  }
  func.func @transform_1(%arg0: i32) -> (i32, i32) {
    %c0_i32 = arith.constant 0 : i32
    %c0_i32_0 = arith.constant 0 : i32
    %c0_i32_1 = arith.constant 0 : i32
    return %c0_i32, %c0_i32_0 : i32, i32
  }
  func.func @transform_2(%arg0: i32) -> (i32, i32) {
    %c0_i32 = arith.constant 0 : i32
    %c0_i32_0 = arith.constant 0 : i32
    %c0_i32_1 = arith.constant 0 : i32
    return %c0_i32, %c0_i32_0 : i32, i32
  }
  func.func @transform_3(%arg0: i32) -> (i32, i32) {
    %c0_i32 = arith.constant 0 : i32
    %c0_i32_0 = arith.constant 0 : i32
    %c0_i32_1 = arith.constant 0 : i32
    return %c0_i32, %c0_i32_0 : i32, i32
  }
  func.func @transform_4(%arg0: i32) -> (i32, i32) {
    %c0_i32 = arith.constant 0 : i32
    %c0_i32_0 = arith.constant 0 : i32
    %c0_i32_1 = arith.constant 0 : i32
    return %c0_i32, %c0_i32_0 : i32, i32
  }
  func.func @transform_5(%arg0: i32) -> (i32, i32) {
    %c0_i32 = arith.constant 0 : i32
    %c0_i32_0 = arith.constant 0 : i32
    return %arg0, %c0_i32 : i32, i32
  }
}

</mosaic_0001>

<bundles_post_ra>
// kernel: tpu_custom_call.1
= control target key start
LH: loop header
LB: loop body
LE: loop exit
PB: predicated region body
PF: predicated region fallthrough
CT: control target
= control target key end

     0   :  { %10 = vsyncpa [#allocation3], 0  ;;  %s1309_s0 = inlined_call_operand.hbm [shape: bf16[16,256], index: 0, kind: input, shape index: {}]   ;;  %s1310_s1 = inlined_call_operand.hbm [shape: bf16[256,128], index: 1, kind: input, shape index: {}]   ;;  %s1311_s2 = inlined_call_operand.vmem [shape: f32[1,128], index: 2, kind: input, shape index: {}]   ;;  %s1312_s3 = inlined_call_operand.hbm [shape: bf16[128,128], index: 3, kind: input, shape index: {}]   ;;  %s1313_s4 = inlined_call_operand.vmem [shape: f32[1,128], index: 4, kind: input, shape index: {}]   ;;  %s1314_s5 = inlined_call_operand.hbm [shape: f32[16,128], index: 5, kind: output, shape index: {}]  }
   0x1   :  { %12 = vsyncpa [#allocation3 + $0x1], 0 }
   0x2   :  { %13 = vsyncpa [#allocation6], 0 }
   0x3   :  { %14 = vsyncpa [#allocation4], 0 }
   0x4   :  { %16 = vsyncpa [#allocation4 + $0x1], 0  ;;  %s1061_s18 = smov 0   ;;  %s1063_s19 = smov 0  }
   0x5   :  { %s1065_s20 = smov 0   ;;  %s1067_s21 = smov 0  }
   0x6 LB: > { %s1082_s22 = sadd.s32 4294967295, %s1021_s21   ;;  %s671_s23 = sadd.s32 4294967294, %s1021_s21   ;;  %s1021_s21 = sphi %s1067_s21, %s1334_s21   ;;  %s1017_s20 = sphi %s1065_s20, %s1333_s20   ;;  %s1013_s19 = sphi %s1063_s19, %s1332_s19   ;;  %s1009_s18 = sphi %s1061_s18, %s1331_s18  }
   0x7   : > { %p42_p0 = scmp.ne.s32.totalorder %s1013_s19, %s1009_s18  ;;  %p1315_p1 = scmp.eq.s32.totalorder %s1082_s22, 0 }
   0x8   : > { %p156_p3 = scmp.eq.s32.totalorder %s671_s23, 1  ;;  %p672_p5 = scmp.ge.s32.totalorder %s1021_s21, 1 }
   0x9   : > { %p1091_p4 = por %p1315_p1, %p42_p0  ;;  %p163_p7 = scmp.lt.s32.totalorder %s1021_s21, 3 }
   0xa   : > { %p1096_p6 = por %p156_p3, %p42_p0  ;;  %s1023_s27 = smov [#allocation5]  }
   0xb   : > { %s1318_s24 = scalar_select %p1091_p4, 1, 0 }
   0xc   : > { %s1319_s25 = scalar_select %p1096_p6, 1, 0 }
   0xd   : > { %p1101_p8 = pnand %p672_p5, %p163_p7  ;;  %s175_s28 = sshll.u32 %s1023_s27, 4  ;;  %s1105_s28 = int_to_ptr.vmem [resolvable:$true] %s175_s28 }
   0xe   : > { %s1024_s30 = smov [#allocation7]   ;;  %s865_s9 = scalar_lea.hbm %s1310_s1, 2048 }
   0xf   : > { %p780_p9 = pneg %p1101_p8  ;;  %s191_s6 = sshll.u32 %s1024_s30, 4  ;;  %s1116_s6 = int_to_ptr.vmem [resolvable:$true] %s191_s6 }
  0x10   : > { %p866_p12 = scmp.ne.s32.totalorder %s1310_s1, %s865_s9  ;;  %p872_p5 = scmp.lt.u32.totalorder %s865_s9, %s1310_s1 }
  0x11   : > { %p1112_p11 = pnand %p780_p9, %p1315_p1 }
  0x13   : > { %p867_p13 = pneg %p1112_p11 }
  0x15   : > { %p868_p0 = pnand %p867_p13, %p866_p12 }
  0x17   : > { %p869_p3 = pneg %p868_p0 }
  0x19   : > { %p874_p7 = pnand %p872_p5, %p869_p3 }
  0x1b   : > { %877 = shalt.err (!%p874_p7)
}
  0x1c   : > { %s878_s14 = scalar_lea.vmem %s1105_s28, 2048  ;;  %p886_p2 = scmp.lt.s32.totalorder %s1105_s28, %s1105_s28 }
  0x1d   : > { %p879_p9 = scmp.ne.s32.totalorder %s1105_s28, %s878_s14  ;;  %p887_p12 = scmp.lt.s32.totalorder %s878_s14, %s878_s14 }
  0x1f   : > { %p881_p10 = pnand %p879_p9, %p867_p13  ;;  %p888_p0 = por %p887_p12, %p886_p2 }
  0x21   : > { %p882_p1 = pneg %p881_p10 }
  0x23   : > { %p889_p6 = pnand %p888_p0, %p882_p1 }
  0x25   : > { %892 = shalt.err (!%p889_p6)
}
  0x26   : > { %s1025_s15 = smov 64   ;;  %s1026_s16 = smov 4  }
  0x27   : > { %783 = dma.hbm_to_vmem [thread:$0]  (!%p1112_p11), %s1310_s1, 2048, %s1105_s28, [#allocation6], %s1025_s15, %s1025_s15, %s1026_s16  }
  0x28   : > { %s893_s7 = scalar_lea.hbm %s1312_s3, 1024 }
  0x29   : > { %p894_p2 = scmp.ne.s32.totalorder %s1312_s3, %s893_s7  ;;  %p900_p10 = scmp.lt.u32.totalorder %s893_s7, %s1312_s3 }
  0x2b   : > { %p896_p1 = pnand %p894_p2, %p867_p13 }
  0x2d   : > { %p897_p6 = pneg %p896_p1 }
  0x2f   : > { %p902_p3 = pnand %p900_p10, %p897_p6 }
  0x31   : > { %905 = shalt.err (!%p902_p3)
}
  0x32   : > { %s906_s28 = scalar_lea.vmem %s1116_s6, 1024  ;;  %p914_p12 = scmp.lt.s32.totalorder %s1116_s6, %s1116_s6 }
  0x33   : > { %p907_p5 = scmp.ne.s32.totalorder %s1116_s6, %s906_s28  ;;  %p915_p0 = scmp.lt.s32.totalorder %s906_s28, %s906_s28 }
  0x35   : > { %p909_p7 = pnand %p907_p5, %p867_p13  ;;  %p916_p2 = por %p915_p0, %p914_p12 }
  0x37   : > { %p910_p9 = pneg %p909_p7 }
  0x39   : > { %p917_p1 = pnand %p916_p2, %p910_p9 }
  0x3b   : > { %920 = shalt.err (!%p917_p1)
}
  0x3c   : > { %786 = dma.hbm_to_vmem [thread:$0]  (!%p1112_p11), %s1312_s3, 1024, %s1116_s6, [#allocation6], %s1025_s15, %s1025_s15, %s1026_s16  }
  0x3d   : > { %s1171_s14 = sadd.s32 1, %s1021_s21   ;;  %s29_s29 = sadd.s32 1, %s1017_s20 }
  0x3e   : > { %s26_s17 = ssub.s32 %s1021_s21, %s1171_s14  ;;  %p36_p13 = scmp.ne.s32.totalorder %s1017_s20, %s1013_s19 }
  0x3f   : > { %p27_p6 = scmp.eq.s32.totalorder %s26_s17, 0  ;;  %p37_p10 = scmp.eq.s32.totalorder %s1021_s21, 0 }
  0x40   : > { %p1322_p3 = scmp.eq.s32.totalorder %s1082_s22, 1  ;;  %p797_p7 = scmp.lt.s32.totalorder %s1021_s21, 2 }
  0x41   : > { %s1187_s27 = scalar_select %p27_p6, %s1017_s20, %s29_s29  }
  0x42   : > { %p1181_p5 = por %p1322_p3, %p36_p13  ;;  %p38_p9 = por %p37_p10, %p36_p13 }
  0x43   : > { %s208_s30 = sand.u32 1, %s1017_s20   ;;  %s716_s6 = sshll.u32 %s1021_s21, 7 }
  0x44   : > { %s1323_s23 = scalar_select %p1181_p5, 1, 0 }
  0x45   : > { %s676_s7 = sshll.u32 %s208_s30, 3  ;;  %s1194_s8 = scalar_lea.hbm %s1309_s0, %s716_s6 }
  0x46   : > { %s212_s9 = scalar_lea.vmem [#allocation2], %s676_s7  ;;  %p1198_p11 = pnand %p797_p7, %p38_p9 }
  0x47   : > { %s220_s10 = sshll.u32 %s212_s9, 4  ;;  %s209_s28 = scalar_lea.sflag [#allocation3], %s208_s30  ;;  %s1196_s10 = int_to_ptr.vmem [resolvable:$true] %s220_s10 }
  0x48   : > { %s921_s12 = scalar_lea.hbm %s1194_s8, 128  ;;  %p923_p0 = pneg %p1198_p11 }
  0x49   : > { %p922_p12 = scmp.ne.s32.totalorder %s1194_s8, %s921_s12  ;;  %s926_s17 = scalar_lea.hbm %s1309_s0, 256 }
  0x4a   : > { %p927_p13 = scmp.lt.u32.totalorder %s1194_s8, %s1309_s0  ;;  %p928_p6 = scmp.lt.u32.totalorder %s926_s17, %s921_s12 }
  0x4b   : > { %p924_p2 = pnand %p923_p0, %p922_p12  ;;  %p930_p3 = scmp.lt.u32.totalorder %s921_s12, %s1194_s8 }
  0x4c   : > { %p929_p10 = por %p928_p6, %p927_p13 }
  0x4d   : > { %p925_p1 = pneg %p924_p2 }
  0x4e   : > { %p931_p7 = por %p930_p3, %p929_p10 }
  0x50   : > { %p932_p9 = pnand %p931_p7, %p925_p1 }
  0x52   : > { %935 = shalt.err (!%p932_p9)
}
  0x53   : > { %s936_s30 = scalar_lea.vmem %s1196_s10, 128  ;;  %s1027_s15 = smov [#allocation2]  }
  0x54   : > { %p937_p12 = scmp.ne.s32.totalorder %s1196_s10, %s936_s30  ;;  %s941_s16 = sshll.u32 %s1027_s15, 4  ;;  %s942_s16 = int_to_ptr.vmem [resolvable:$false] %s941_s16 }
  0x55   : > { %s943_s9 = scalar_lea.vmem %s942_s16, 256  ;;  %p944_p4 = scmp.lt.s32.totalorder %s1196_s10, %s942_s16 }
  0x56   : > { %p939_p2 = pnand %p937_p12, %p923_p0  ;;  %p945_p13 = scmp.lt.s32.totalorder %s943_s9, %s936_s30 }
  0x58   : > { %p940_p5 = pneg %p939_p2  ;;  %p946_p6 = por %p945_p13, %p944_p4 }
  0x5a   : > { %p947_p10 = pnand %p946_p6, %p940_p5 }
  0x5c   : > { %950 = shalt.err (!%p947_p10)
}
  0x5d   : > { %790 = dma.hbm_to_vmem [thread:$0]  (!%p1198_p11), %s1194_s8, 128, %s1196_s10, %s209_s28  }
  0x5e   : > { %229 = sbr.rel (%p1101_p8) target bundleno = 587 (0x24b), region = 40  ;;  %s1230_s12 = sand.u32 (!%p1101_p8), 1, %s1013_s19  }
  0x5f   : > { %s680_s13 = sshll.u32 (!%p1101_p8), %s1230_s12, 3  ;;  %s232_s29 = scalar_lea.sflag (!%p1101_p8), [#allocation3], %s1230_s12 }
  0x60   : > { %s235_s17 = scalar_lea.vmem (!%p1101_p8), [#allocation2], %s680_s13  ;;  %p1325_p4 = scmp.ne.s32.totalorder (!%p1101_p8), %s1318_s24, 0 }
  0x65   : > { %996 = dma.done.wait (%p1325_p4), %s232_s29, 128  }
  0x66   : > { %998 = vsyncadd (%p1325_p4), %s232_s29, 4294967168  ;;  %p1326_p5 = scmp.eq.s32.totalorder %s1082_s22, 0 }
  0x68   : > { %1000 = dma.done.wait (%p1326_p5), [#allocation6], 3072   ;;  %p1327_p8 = pmov %p1326_p5 }
  0x69   : > { %v1028_v0 = vmov 0.0   ;;  %v839_v1 = vld [vmem:[#allocation5 + $0x40] sm:$0xff]   ;;  %v841_v3 = vld [vmem:[#allocation5 + $0x48] sm:$0xff]   ;;  %v843_v5 = vld [vmem:[#allocation5 + $0x50] sm:$0xff]   ;;  %vm1029_vm0 = vmmov 0   ;;  %s713_s11 = sshll.u32 %s1082_s22, 7 }
  0x6a   : > { %1002 = vsyncadd (%p1327_p8), [#allocation6], 4294964224  ;;  %748 = vmatprep.subr.bf16.mxu1 %v1028_v0  ;;  %v840_v2 = vld [vmem:[#allocation5] sm:$0xff]   ;;  %717 = vmatprep.subr.bf16.mxu0 %v839_v1  ;;  %v842_v4 = vld [vmem:[#allocation5 + $0x8] sm:$0xff]   ;;  %s269_s28 = scalar_lea.vmem [#allocation8], %s680_s13  ;;  %s1265_s15 = scalar_lea.hbm %s1314_s5, %s713_s11 }
  0x6b   : > { %718 = vmatpush3.bf16.msra.mxu0 %v840_v2  ;;  %v844_v6 = vld [vmem:[#allocation5 + $0x10] sm:$0xff]   ;;  %v845_v7 = vld [vmem:[#allocation5 + $0x58] sm:$0xff]   ;;  %v847_v9 = vld [vmem:[#allocation5 + $0x60] sm:$0xff]   ;;  %764 = vmatprep.mubr.msk.bf16.mxu1 %vm1029_vm0, %v1028_v0  ;;  %s582_s7 = sshll.u32 %s269_s28, 4  ;;  %s569_s22 = scalar_lea.sflag [#allocation4], %s1230_s12  ;;  %s1267_s7 = int_to_ptr.vmem [resolvable:$true] %s582_s7 }
  0x6c   : > { %719 = vmatprep.subr.bf16.mxu0 %v841_v3  ;;  %v846_v8 = vld [vmem:[#allocation5 + $0x18] sm:$0xff]   ;;  %v848_v10 = vld [vmem:[#allocation5 + $0x20] sm:$0xff]   ;;  %v849_v11 = vld [vmem:[#allocation5 + $0x68] sm:$0xff]   ;;  %s951_s16 = scalar_lea.vmem %s1267_s7, 128  ;;  %p1328_p0 = scmp.ne.s32.totalorder %s1323_s23, 0 }
  0x6d   : > { %v271_v12 = vld [vmem:[%s235_s17] sm:$0xff]  ;;  %v857_v14 = vld [vmem:[#allocation7] sm:$0xff]   ;;  %v850_v15 = vld [vmem:[#allocation5 + $0x28] sm:$0xff]   ;;  %p952_p11 = scmp.ne.s32.totalorder %s1267_s7, %s951_s16  ;;  %s1030_s9 = smov [#allocation8]  }
  0x6e   : > { %v686_v13 = vcombine.high %v271_v12, %v271_v12  ;;  %v851_v16 = vld [vmem:[#allocation5 + $0x70] sm:$0xff]   ;;  %749 = vmatpush3.bf16.msra.mxu1 %v857_v14  ;;  %v858_v17 = vld [vmem:[#allocation7 + $0x8] sm:$0xff]   ;;  %v853_v19 = vld [vmem:[#allocation5 + $0x78] sm:$0xff]   ;;  %v685_v23 = vcombine.low %v271_v12, %v271_v12  ;;  %s955_s13 = sshll.u32 %s1030_s9, 4  ;;  %s956_s13 = int_to_ptr.vmem [resolvable:$false] %s955_s13 }
  0x6f   : > { %720 = vmatpush3.bf16.msra.mxu0 %v842_v4  ;;  %750 = vmatprep.subr.bf16.mxu1 %v1028_v0  ;;  %v852_v18 = vld [vmem:[#allocation5 + $0x30] sm:$0xff]   ;;  %v854_v21 = vld [vmem:[#allocation5 + $0x38] sm:$0xff]   ;;  %v861_v24 = vld [vmem:[#allocation7 + $0x20] sm:$0xff]   ;;  %p953_p1 = pnand %p952_p11, %p1328_p0  ;;  %s957_s29 = scalar_lea.vmem %s956_s13, 256 }
  0x70   : > { %721 = vmatprep.subr.bf16.mxu0 %v843_v5  ;;  %446 = vmatprep.mubr.bf16.mxu0 %v686_v13  ;;  %v859_v20 = vld [vmem:[#allocation7 + $0x10] sm:$0xff]   ;;  %v860_v22 = vld [vmem:[#allocation7 + $0x18] sm:$0xff]   ;;  %v862_v25 = vld [vmem:[#allocation7 + $0x28] sm:$0xff]   ;;  %p958_p7 = scmp.lt.s32.totalorder %s1267_s7, %s956_s13  ;;  %p959_p9 = scmp.lt.s32.totalorder %s957_s29, %s951_s16 }
  0x71   : > { %v863_v26 = vld [vmem:[#allocation7 + $0x30] sm:$0xff]   ;;  %v864_v27 = vld [vmem:[#allocation7 + $0x38] sm:$0xff]   ;;  %p954_p3 = pneg %p953_p1 }
  0x72   : > { %751 = vmatpush3.bf16.msra.mxu1 %v858_v17  ;;  %v684_v29 = vld [vmem:[%s1311_s2] ss:$0 sm:$0xff]  ;;  %p960_p12 = por %p959_p9, %p958_p7 }
  0x73   : > { %722 = vmatpush3.bf16.msra.mxu0 %v844_v6  ;;  %752 = vmatprep.subr.bf16.mxu1 %v1028_v0  ;;  %v703_v37 = vld [vmem:[%s1313_s4] ss:$0 sm:$0xff] }
  0x74   : > { %723 = vmatprep.subr.bf16.mxu0 %v845_v7  ;;  %p961_p2 = pnand %p960_p12, %p954_p3 }
  0x76   : > { %753 = vmatpush3.bf16.msra.mxu1 %v859_v20 }
  0x77   : > { %724 = vmatpush3.bf16.msra.mxu0 %v846_v8  ;;  %754 = vmatprep.subr.bf16.mxu1 %v1028_v0 }
  0x78   : > { %725 = vmatprep.subr.bf16.mxu0 %v847_v9 }
  0x7a   : > { %755 = vmatpush3.bf16.msra.mxu1 %v860_v22 }
  0x7b   : > { %726 = vmatpush3.bf16.msra.mxu0 %v848_v10  ;;  %756 = vmatprep.subr.bf16.mxu1 %v1028_v0 }
  0x7c   : > { %727 = vmatprep.subr.bf16.mxu0 %v849_v11 }
  0x7e   : > { %757 = vmatpush3.bf16.msra.mxu1 %v861_v24 }
  0x7f   : > { %728 = vmatpush3.bf16.msra.mxu0 %v850_v15  ;;  %758 = vmatprep.subr.bf16.mxu1 %v1028_v0 }
  0x80   : > { %729 = vmatprep.subr.bf16.mxu0 %v851_v16 }
  0x82   : > { %759 = vmatpush3.bf16.msra.mxu1 %v862_v25 }
  0x83   : > { %730 = vmatpush3.bf16.msra.mxu0 %v852_v18  ;;  %760 = vmatprep.subr.bf16.mxu1 %v1028_v0 }
  0x84   : > { %731 = vmatprep.subr.bf16.mxu0 %v853_v19 }
  0x86   : > { %761 = vmatpush3.bf16.msra.mxu1 %v863_v26 }
  0x87   : > { %732 = vmatpush3.bf16.msra.mxu0 %v854_v21  ;;  %762 = vmatprep.subr.bf16.mxu1 %v1028_v0 }
  0x8a   : > { %447 = vmatmul.mubr.bf16.vlgmr.msra.gmra.mrb[0].mxu0 %v685_v23  ;;  %763 = vmatpush3.bf16.msra.mxu1 %v864_v27 }
 0x15d   : > { %v733_v28 = vpop.f32.mrb[0].mxu0 }
 0x15e   : > { %v734_v30 = vpop.f32.mrb[1].mxu0 }
 0x15f   : > { %v735_v31 = vadd.f32 %v734_v30, %v733_v28  ;;  %v736_v32 = vpop.f32.mrb[2].mxu0 }
 0x160   : > { %v737_v33 = vpop.f32.mrb[3].mxu0 }
 0x161   : > { %v449_v34 = vadd.f32 %v735_v31, %v684_v29 }
 0x163   : > { %v454_v35 = vmax.f32 %v449_v34, 0.0 }
 0x165   : > { %v455_v36 = vpack.c.bf16 %v454_v35, %v454_v35 }
 0x167   : > { %765 = vmatmul.mubr.bf16.vlgmr.msra.gmra.mrb[0].mxu1 %v455_v36 }
 0x23a   : > { %v561_v38 = vpop.f32.mrb[0].mxu1 }
 0x23b   : > { %v562_v39 = vadd.f32 %v703_v37, %v561_v38  ;;  %v766_v40 = vpop.f32.mrb[1].mxu1 }
 0x23c   : > { %v564_v41 = vpop.f32.mrb[2].mxu1 }
 0x23d   : > { %567 = vst [vmem:[%s269_s28] sm:$0xff] %v562_v39  ;;  %v767_v42 = vpop.f32.mrb[3].mxu1 }
 0x23e   : > { %964 = shalt.err (!%p961_p2)
}
 0x23f   : > { %s965_s12 = scalar_lea.hbm %s1265_s15, 128  ;;  %s969_s26 = scalar_lea.hbm %s1314_s5, 256 }
 0x240   : > { %p966_p13 = scmp.ne.s32.totalorder %s1265_s15, %s965_s12  ;;  %p970_p4 = scmp.lt.u32.totalorder %s1265_s15, %s1314_s5 }
 0x241   : > { %p971_p5 = scmp.lt.u32.totalorder %s969_s26, %s965_s12  ;;  %p973_p11 = scmp.lt.u32.totalorder %s965_s12, %s1265_s15 }
 0x242   : > { %p967_p6 = pnand %p966_p13, %p1328_p0 }
 0x243   : > { %p972_p8 = por %p971_p5, %p970_p4 }
 0x244   : > { %p968_p10 = pneg %p967_p6 }
 0x245   : > { %p974_p1 = por %p973_p11, %p972_p8 }
 0x247   : > { %p975_p3 = pnand %p974_p1, %p968_p10 }
 0x249   : > { %978 = shalt.err (!%p975_p3)
}
 0x24a   : > { %778 = dma.vmem_to_hbm [thread:$0]  (%p1328_p0), %s1267_s7, 128, %s1265_s15, %s569_s22  }
 0x24b PF: > { %s594_s11 = sand.u32 1, %s1009_s18   ;;  %p1329_p7 = scmp.ne.s32.totalorder %s1319_s25, 0 }
 0x24c   : > { %p1330_p9 = scmp.ge.s32.totalorder %s1021_s21, 2  ;;  %s595_s28 = scalar_lea.sflag [#allocation4], %s594_s11 }
 0x24e   : > { %p792_p12 = pnand %p1330_p9, %p1329_p7 }
 0x250   : > { %1004 = dma.done.wait (!%p792_p12), %s595_s28, 128  }
 0x251   : > { %1006 = vsyncadd (!%p792_p12), %s595_s28, 4294967168  ;;  %p19_p2 = scmp.ge.s32.totalorder %s1171_s14, 4   ;;  %s1331_s18 = smov %s1013_s19 }
 0x252   : > { %s1332_s19 = smov %s1017_s20  ;;  %s1333_s20 = smov %s1187_s27 }
 0x253   : > { %s1334_s21 = smov %s1171_s14  ;;  %21 = sbr.rel (!%p19_p2) target bundleno = 6 (0x6), region = 93 }
 0x25a   :  { %600 = vsyncpa [#allocation3], 1 }
 0x25b   :  { %602 = vsyncpa [#allocation3 + $0x1], 1 }
 0x25c   :  { %603 = vsyncpa [#allocation6], 1 }
 0x25d   :  { %604 = vsyncpa [#allocation4], 1 }
 0x25e   :  { %606 = vsyncpa [#allocation4 + $0x1], 1 }

</bundles_post_ra>
